<compile_context>
chip_gen: v5e
topology: v5e:2x2
jax: 0.10.0
libtpu: 0.0.40
codegen_flags: <defaults>
</compile_context>

<pallas_src>
import math

import jax
import jax.numpy as jnp
from jax.experimental import pallas as pl
from jax.experimental.pallas import tpu as pltpu


# ---------------------------------------------------------------------------
# Static item normalization
# ---------------------------------------------------------------------------
def _normalize_item(item, shape):
    """Per-dim selectors (start, length, keep) for int / step-1-slice items.

    Returns None when the item needs the generic XLA fallback (step != 1,
    newaxis, boolean/array indexing, ...).
    """
    if not isinstance(item, tuple):
        item = (item,)

    # Expand a single Ellipsis into full slices.
    if any(it is Ellipsis for it in item):
        if sum(1 for it in item if it is Ellipsis) != 1:
            return None
        pos = item.index(Ellipsis)
        fill = len(shape) - (len(item) - 1)
        if fill < 0:
            return None
        item = item[:pos] + (slice(None),) * fill + item[pos + 1:]

    if len(item) > len(shape):
        return None
    item = item + (slice(None),) * (len(shape) - len(item))

    sel = []
    for dim, it in zip(shape, item):
        if isinstance(it, int) and not isinstance(it, bool):
            k = it + dim if it < 0 else it
            if not (0 <= k < dim):
                raise IndexError(f"index {it} out of range for dim {dim}")
            sel.append((k, 1, False))          # int -> length-1, squeezed later
        elif isinstance(it, slice):
            start, stop, step = it.indices(dim)
            if step != 1:
                return None                    # TODO(synk): strided slices -> XLA fallback
            sel.append((start, max(stop - start, 0), True))
        else:
            return None                        # newaxis / bool / array indices -> XLA fallback
    return sel


# ---------------------------------------------------------------------------
# Pallas kernel (pure copy of the selected, already-windowed block)
# ---------------------------------------------------------------------------
def _copy_kernel(x_ref, o_ref):
    o_ref[...] = x_ref[...]


_LANE_CANDIDATES = (4096, 2048, 1024, 512, 256, 128)   # lane width: multiple of 128
_TARGET_BLOCK_BYTES = 1 << 20                          # ~1 MiB/block; x4 buffers << scoped VMEM
_MIN_PALLAS_ELEMS = 1 << 15                            # below this XLA's slice wins


def getitem_pallas(x, item, *, force_pallas=False):
    """x[item] with the data movement done by a tiled Pallas copy kernel."""
    sel = _normalize_item(item, x.shape)

    def _fallback():
        return x[item]                         # XLA native slice / gather

    if sel is None or any(length == 0 for _, length, _ in sel):
        return _fallback()

    ndim = x.ndim
    # Maximal trailing run of *full* slices -> one contiguous "inner" extent.
    suffix = 0
    for start, length, keep in reversed(sel):
        if keep and start == 0 and length == x.shape[ndim - 1 - suffix]:
            suffix += 1
        else:
            break

    inner = math.prod(x.shape[ndim - suffix:]) if suffix else 0
    out_shape = tuple(length for _, length, keep in sel if keep)
    out_elems = math.prod(out_shape) if out_shape else 0

    if (suffix == 0 or inner % 128 != 0 or not out_shape
            or (out_elems < _MIN_PALLAS_ELEMS and not force_pallas)):
        # TODO(synk): lane-unfriendly trailing extents / scalar results use XLA's slice.
        return _fallback()

    lead_sel = sel[: ndim - suffix]
    m = len(lead_sel)
    lead_starts = tuple(s for s, _, _ in lead_sel)
    lead_lens = tuple(l for _, l, _ in lead_sel)

    # Split the contiguous inner extent into lane-dense (rows, lanes) so the
    # last two block dims satisfy (8, 128) tiling and stores are unmasked.
    lanes = next(c for c in _LANE_CANDIDATES if inner % c == 0)
    rows = inner // lanes
    itemsize = x.dtype.itemsize
    row_budget = max(1, _TARGET_BLOCK_BYTES // (lanes * itemsize))
    if row_budget >= rows:
        block_rows = rows                                   # full extent
    else:
        block_rows = min(rows, max(8, (row_budget // 8) * 8))
        if block_rows < rows and block_rows % 8 != 0:
            block_rows = rows                               # safety net

    x_view = x.reshape(x.shape[:m] + (rows, lanes))

    # One grid axis per leading dim (block 1, static start folded into the
    # index_map) plus one axis tiling the dense inner rows.
    grid = lead_lens + (pl.cdiv(rows, block_rows),)
    block = (1,) * m + (block_rows, lanes)

    def in_index_map(*g):
        return tuple(lead_starts[i] + g[i] for i in range(m)) + (g[m], 0)

    def out_index_map(*g):
        return tuple(g[i] for i in range(m)) + (g[m], 0)

    kernel_out_shape = lead_lens + (rows, lanes)

    out = pl.pallas_call(
        _copy_kernel,
        out_shape=jax.ShapeDtypeStruct(kernel_out_shape, x.dtype),
        grid=grid,
        in_specs=[pl.BlockSpec(block, in_index_map)],
        out_specs=pl.BlockSpec(block, out_index_map),
        compiler_params=pltpu.CompilerParams(
            dimension_semantics=("parallel",) * len(grid)),
    )(x_view)

    # Drop int-indexed (squeezed) leading dims, restore original trailing dims.
    final_shape = tuple(l for _, l, keep in lead_sel if keep) + x.shape[ndim - suffix:]
    return out.reshape(final_shape)


class GetItem:
    """Mirror of the PyTorch module (stateless; stores the static item)."""

    def __init__(self, item, force_pallas=False):
        self.item = item
        self.force_pallas = force_pallas

    def __call__(self, x):
        return getitem_pallas(x, self.item, force_pallas=self.force_pallas)

    def __str__(self):
        return "GetItem()"


if __name__ == "__main__":
    key = jax.random.PRNGKey(0)
    # Small NCHW tensor consistent with a conv-style feature map.
    x = jax.random.normal(key, (2, 4, 16, 16), dtype=jnp.float32)

    # 1) item = (slice(None), 2)  ==  x[:, 2]  -> (2, 16, 16)
    mod = GetItem((slice(None), 2), force_pallas=True)
    out = jax.block_until_ready(mod(x))
    ref = x[:, 2]
    assert out.shape == ref.shape and out.dtype == ref.dtype
    assert bool(jnp.allclose(out, ref)), "mismatch vs reference x[:, 2]"

    # 2) leading partial slices: x[1:2, 0:3] -> (1, 3, 16, 16)
    mod2 = GetItem((slice(1, 2), slice(0, 3)), force_pallas=True)
    out2 = jax.block_until_ready(mod2(x))
    ref2 = x[1:2, 0:3]
    assert out2.shape == ref2.shape and bool(jnp.allclose(out2, ref2))

    # 3) Ellipsis + negative int: x[..., -1, :, :] == x[:, 3]
    mod3 = GetItem((Ellipsis, -1, slice(None), slice(None)), force_pallas=True)
    out3 = jax.block_until_ready(mod3(x))
    ref3 = x[..., -1, :, :]
    assert out3.shape == ref3.shape and bool(jnp.allclose(out3, ref3))

    print("KERNEL_OK")
</pallas_src>

<mosaic_0001>
module attributes {stable_mosaic.version = 11 : i64} {
  func.func @_copy_kernel(%arg0: i32, %arg1: i32, %arg2: i32, %arg3: memref<1x1x1x256xf32, #tpu.memory_space<vmem>>, %arg4: memref<1x1x1x256xf32, #tpu.memory_space<vmem>>) attributes {dimension_semantics = [#tpu.dimension_semantics<parallel>, #tpu.dimension_semantics<parallel>, #tpu.dimension_semantics<parallel>], iteration_bounds = array<i64: 2, 1, 1>, scalar_prefetch = 0 : i64, scratch_operands = 0 : i64, tpu.core_type = #tpu.core_type<tc>, window_params = [{transform_indices = @transform_0, window_bounds = array<i64: 1, 1, 1, 256>}, {transform_indices = @transform_1, window_bounds = array<i64: 1, 1, 1, 256>}]} {
    %c0 = arith.constant 0 : index
    %c0_0 = arith.constant 0 : index
    %c0_1 = arith.constant 0 : index
    %c0_2 = arith.constant 0 : index
    %0 = vector.load %arg3[%c0, %c0_0, %c0_1, %c0_2] : memref<1x1x1x256xf32, #tpu.memory_space<vmem>>, vector<1x1x1x256xf32>
    %c0_3 = arith.constant 0 : index
    %c0_4 = arith.constant 0 : index
    %c0_5 = arith.constant 0 : index
    %c0_6 = arith.constant 0 : index
    %1 = vector.load %arg4[%c0_3, %c0_4, %c0_5, %c0_6] : memref<1x1x1x256xf32, #tpu.memory_space<vmem>>, vector<1x1x1x256xf32>
    tpu.vector_store %arg4[%c0_3, %c0_4, %c0_5, %c0_6], %0 {strides = array<i32>} : memref<1x1x1x256xf32, #tpu.memory_space<vmem>>, vector<1x1x1x256xf32>,
    return
  }
  func.func @transform_0(%arg0: i32, %arg1: i32, %arg2: i32) -> (i32, i32, i32, i32) {
    %c0_i32 = arith.constant 0 : i32
    %0 = arith.addi %c0_i32, %arg0 : i32
    %c2_i32 = arith.constant 2 : i32
    %1 = arith.addi %c2_i32, %arg1 : i32
    %c0_i32_0 = arith.constant 0 : i32
    %c0_i32_1 = arith.constant 0 : i32
    return %0, %1, %arg2, %c0_i32_0 : i32, i32, i32, i32
  }
  func.func @transform_1(%arg0: i32, %arg1: i32, %arg2: i32) -> (i32, i32, i32, i32) {
    %c0_i32 = arith.constant 0 : i32
    %c0_i32_0 = arith.constant 0 : i32
    return %arg0, %arg1, %arg2, %c0_i32 : i32, i32, i32, i32
  }
}

</mosaic_0001>

<bundles_post_ra>
// kernel: tpu_custom_call.1
= control target key start
LH: loop header
LB: loop body
LE: loop exit
PB: predicated region body
PF: predicated region fallthrough
CT: control target
= control target key end

     0   :  { %6 = vsyncpa [#allocation3], 0  ;;  %s604_s0 = inlined_call_operand.hbm [shape: f32[2,4,1,256], index: 0, kind: input, shape index: {}]   ;;  %s605_s1 = inlined_call_operand.hbm [shape: f32[2,1,1,256], index: 1, kind: output, shape index: {}]  }
   0x1   :  { %8 = vsyncpa [#allocation3 + $0x1], 0 }
   0x2   :  { %9 = vsyncpa [#allocation4], 0 }
   0x3   :  { %11 = vsyncpa [#allocation4 + $0x1], 0  ;;  %s484_s6 = smov 0   ;;  %s486_s7 = smov 0  }
   0x4   :  { %s488_s8 = smov 0   ;;  %s490_s9 = smov 0  }
   0x5   :  { %s492_s10 = smov 0   ;;  %s494_s11 = smov 0  }
   0x6 LB: > { %s285_s12 = sadd.s32 4294967295, %s472_s11   ;;  %s286_s13 = sadd.s32 4294967294, %s472_s11   ;;  %s472_s11 = sphi %s494_s11, %s17_s11   ;;  %s468_s10 = sphi %s492_s10, %s614_s10   ;;  %s464_s9 = sphi %s490_s9, %s613_s9   ;;  %s460_s8 = sphi %s488_s8, %s612_s8   ;;  %s456_s7 = sphi %s486_s7, %s611_s7   ;;  %s452_s6 = sphi %s484_s6, %s610_s6  }
   0x7   : > { %s36_s14 = sadd.s32 1, %s468_s10  ;;  %s49_s15 = sadd.s32 1, %s460_s8 }
   0x8   : > { %p38_p0 = scmp.ge.s32.totalorder %s36_s14, 2  ;;  %p56_p1 = scmp.ne.s32.totalorder %s460_s8, %s456_s7 }
   0x9   : > { %p57_p2 = scmp.eq.s32.totalorder %s472_s11, 0  ;;  %p62_p3 = scmp.ne.s32.totalorder %s456_s7, %s452_s6 }
   0xa   : > { %s616_s14 = smov (%p38_p0, %s36_s14), 0  ;;  %p63_p5 = scmp.eq.s32.totalorder %s285_s12, 0 }
   0xb   : > { %p525_p4 = por %p57_p2, %p56_p1  ;;  %s42_s17 = ssub.s32 %s468_s10, %s616_s14 }
   0xc   : > { %p90_p6 = scmp.eq.s32.totalorder %s285_s12, 1  ;;  %p47_p7 = scmp.eq.s32.totalorder %s42_s17, 0 }
   0xd   : > { %p531_p8 = por %p63_p5, %p62_p3  ;;  %p96_p10 = scmp.eq.s32.totalorder %s286_s13, 1 }
   0xe   : > { %p535_p9 = por %p90_p6, %p56_p1  ;;  %p288_p12 = scmp.ge.s32.totalorder %s472_s11, 2 }
   0xf   : > { %s540_s20 = scalar_select %p47_p7, %s460_s8, %s49_s15  }
  0x10   : > { %p542_p11 = por %p96_p10, %p62_p3  ;;  %p310_p13 = scmp.lt.s32.totalorder %s472_s11, 2 }
  0x11   : > { %s116_s22 = sand.u32 1, %s460_s8   ;;  %s290_s24 = sshll.u32 %s468_s10, 3 }
  0x12   : > { %s289_s23 = sshll.u32 %s116_s22, 1  ;;  %s227_s27 = scalar_lea.hbm %s604_s0, %s290_s24 }
  0x13   : > { %s120_s28 = scalar_lea.vmem [#allocation2], %s289_s23  ;;  %s228_s30 = scalar_lea.hbm %s227_s27, 4 }
  0x14   : > { %s133_s29 = sshll.u32 %s120_s28, 4  ;;  %s131_s2 = sshll.u32 %s228_s30, 4  ;;  %s134_s29 = int_to_ptr.vmem [resolvable:$true] %s133_s29  ;;  %s132_s2 = int_to_ptr.hbm [resolvable:$true] %s131_s2 }
  0x15   : > { %p303_p0 = pnand %p310_p13, %p525_p4  ;;  %p291_p1 = scmp.ge.s32.totalorder %s472_s11, 1 }
  0x16   : > { %p138_p2 = scmp.lt.s32.totalorder %s472_s11, 3  ;;  %s117_s3 = scalar_lea.sflag [#allocation3], %s116_s22 }
  0x17   : > { %305 = dma.hbm_to_vmem [thread:$0]  (!%p303_p0), %s132_s2, 32, %s134_s29, %s117_s3  }
  0x18   : > { %p139_p3 = pnand %p291_p1, %p138_p2 }
  0x19   : > { %s558_s4 = sand.u32 (!%p139_p3), 1, %s456_s7  }
  0x1a   : > { %142 = sbr.rel (%p139_p3) target bundleno = 47 (0x2f), region = 24  ;;  %s292_s5 = sshll.u32 (!%p139_p3), %s558_s4, 1 }
  0x1b   : > { %s145_s12 = scalar_lea.sflag (!%p139_p3), [#allocation3], %s558_s4  ;;  %s148_s13 = scalar_lea.vmem (!%p139_p3), [#allocation2], %s292_s5 }
  0x1f   : > { %443 = dma.done.wait (%p531_p8), %s145_s12, 32  }
  0x20   : > { %445 = vsyncadd (%p531_p8), %s145_s12, 4294967264  ;;  %v170_v0 = vlaneseq  ;;  %s295_s15 = sshll.u32 %s464_s9, 1  ;;  %s167_s23 = scalar_lea.vmem [#allocation5], %s292_s5  ;;  %v169_v1 = vld [vmem:[%s148_s13] sm:$0x3] }
  0x21   : > { %s190_s22 = scalar_lea.hbm %s605_s1, %s295_s15  ;;  %s192_s24 = sshll.u32 %s167_s23, 4  ;;  %s193_s24 = int_to_ptr.vmem [resolvable:$true] %s192_s24 }
  0x22   : > { %s194_s25 = sshll.u32 %s190_s22, 4  ;;  %vm172_vm0 = vcmp.lt.s32.totalorder %v170_v0, 256  ;;  %s176_s26 = scalar_lea.sflag [#allocation4], %s558_s4  ;;  %s195_s25 = int_to_ptr.hbm [resolvable:$true] %s194_s25 }
  0x23   : > { %174 = vst.msk [vmem:[%s167_s23] sm:$0x3] %vm172_vm0, %v169_v1  ;;  %s404_s18 = sshra.s32 %s195_s25, 4  ;;  %s410_s29 = scalar_lea.hbm %s605_s1, 4  ;;  %s405_s18 = int_to_ptr.hbm [resolvable:$true] %s404_s18 }
  0x24   : > { %s406_s27 = scalar_lea.hbm %s405_s18, 2  ;;  %p411_p7 = scmp.lt.s32.totalorder %s405_s18, %s605_s1 }
  0x25   : > { %p407_p4 = scmp.ne.s32.totalorder %s405_s18, %s406_s27  ;;  %p412_p8 = scmp.lt.s32.totalorder %s410_s29, %s406_s27 }
  0x27   : > { %p408_p5 = pnand %p407_p4, %p535_p9  ;;  %p413_p10 = por %p412_p8, %p411_p7 }
  0x29   : > { %p409_p6 = pneg %p408_p5 }
  0x2b   : > { %p414_p13 = pnand %p413_p10, %p409_p6 }
  0x2d   : > { %417 = shalt.err (!%p414_p13)
}
  0x2e   : > { %300 = dma.vmem_to_hbm [thread:$0]  (%p535_p9), %s193_s24, 32, %s195_s25, %s176_s26  }
  0x2f PF: > { %s206_s3 = sand.u32 1, %s452_s6   ;;  %p307_p0 = pnand %p288_p12, %p542_p11 }
  0x30   : > { %s207_s4 = scalar_lea.sflag [#allocation4], %s206_s3 }
  0x31   : > { %p308_p1 = pneg %p307_p0 }
  0x33   : > { %447 = dma.done.wait (%p308_p1), %s207_s4, 32  }
  0x34   : > { %449 = vsyncadd (%p308_p1), %s207_s4, 4294967264  ;;  %s17_s11 = sadd.s32 1, %s472_s11   ;;  %s610_s6 = smov %s456_s7 }
  0x35   : > { %p14_p2 = scmp.ge.s32.totalorder %s17_s11, 4   ;;  %s611_s7 = smov %s460_s8 }
  0x36   : > { %s612_s8 = smov %s540_s20  ;;  %s613_s9 = smov %s468_s10 }
  0x37   : > { %s614_s10 = smov %s616_s14  ;;  %16 = sbr.rel (!%p14_p2) target bundleno = 6 (0x6), region = 69 }
  0x3c   :  { %213 = vsyncpa [#allocation3], 1 }
  0x3d   :  { %215 = vsyncpa [#allocation3 + $0x1], 1 }
  0x3e   :  { %216 = vsyncpa [#allocation4], 1 }
  0x3f   :  { %218 = vsyncpa [#allocation4 + $0x1], 1 }

</bundles_post_ra>
